<compile_context>
chip_gen: v7x
topology: tpu7x:2x2x1
jax: 0.10.0
libtpu: 0.0.40
codegen_flags: <defaults>
</compile_context>

<pallas_src>
import functools

import jax
import jax.numpy as jnp
from jax.experimental import pallas as pl
from jax.experimental.pallas import tpu as pltpu

K = 5    # depthwise kernel size
PAD = 2  # padding on each side of H and W


def _ds_layer5_kernel(x_ref, wdw_ref, b1_ref, wbd_ref, b2_ref, o_ref, *, cin):
    # x_ref  : VMEM (H+4, (W+4)*Cin)   padded input, (w, c) interleaved on lanes
    # wdw_ref: VMEM (25, W*Cin) f32    depthwise taps, bn1 scale folded, tiled over w
    # b1_ref : VMEM (1, W*Cin)  f32    bn1 bias (folded), tiled over w
    # wbd_ref: VMEM (W*Cin, W*Cout)    block-diagonal pointwise weight (bn2 scale folded)
    # b2_ref : VMEM (1, W*Cout) f32    bn2 bias (folded), tiled over w
    # o_ref  : VMEM (strip, W*Cout)    lane-dense output strip
    S, _ = o_ref.shape                 # strip rows
    WCin = wdw_ref.shape[1]            # W * Cin lanes

    # Rows [row0, row0 + S + 4) of the padded image feed this output strip.
    row0 = pl.multiple_of(pl.program_id(1) * S, S)
    xs = x_ref[pl.ds(row0, S + 2 * PAD), :]               # (S+4, (W+4)*Cin)

    # Hoisted kw shifts: 5 lane-shifted slabs, cast to f32 once (not per tap).
    shifted = [xs[:, kw * cin: kw * cin + WCin].astype(jnp.float32)
               for kw in range(K)]

    # 5x5 depthwise conv with the bn1 scale folded into the weights.
    # Partial sums over kw are formed on the full (S+4)-row slab so that only
    # K sublane-shifted slices (one per kh) are needed instead of K*K.
    acc = jnp.broadcast_to(b1_ref[...], (S, WCin))         # init with bn1 bias
    for kh in range(K):
        t = kh * K
        part = wdw_ref[t:t + 1, :] * shifted[0]
        for kw in range(1, K):
            part = part + wdw_ref[t + kw:t + kw + 1, :] * shifted[kw]
        acc = acc + part[kh:kh + S, :]
    h1 = jnp.maximum(acc, 0.0)                              # bn1 + relu, (S, W*Cin)

    # 1x1 pointwise conv (bn2 scale folded) as one MXU matmul against the
    # block-diagonal (W*Cin, W*Cout) weight -> lane-dense (S, W*Cout) result.
    out = jnp.dot(h1.astype(wbd_ref.dtype), wbd_ref[...],
                  preferred_element_type=jnp.float32)
    out = jnp.maximum(out + b2_ref[...], 0.0)               # bn2 bias + relu
    o_ref[...] = out.astype(o_ref.dtype)


def ds_layer5_forward(x_nchw, w_dw, w_pw, bn1, bn2, eps=1e-5,
                      mxu_dtype=jnp.bfloat16, strip_rows=8):
    """x_nchw: (B, Cin, H, W); w_dw: (Cin, 1, 5, 5); w_pw: (Cout, Cin, 1, 1).
    bn1 = (gamma, beta, mean, var) over Cin; bn2 likewise over Cout.
    Returns NCHW (B, Cout, H, W)."""
    B, Cin, H, W = x_nchw.shape
    Cout = w_pw.shape[0]
    g1, be1, m1, v1 = bn1
    g2, be2, m2, v2 = bn2

    # Fold BN (inference form) into the conv weights / biases.
    scale1 = g1 * jax.lax.rsqrt(v1 + eps)
    bias1 = be1 - m1 * scale1
    scale2 = g2 * jax.lax.rsqrt(v2 + eps)
    bias2 = be2 - m2 * scale2

    # Depthwise taps tiled over w along the lane axis: lane l = w*Cin + c.
    wd = (w_dw.reshape(Cin, K * K) * scale1[:, None]).T.astype(jnp.float32)    # (25, Cin)
    wdw_lane = jnp.tile(wd, (1, W))                                            # (25, W*Cin)
    b1_lane = jnp.tile(bias1.astype(jnp.float32), W).reshape(1, W * Cin)

    # Pointwise weight as a block-diagonal (W*Cin, W*Cout) matrix so the MXU
    # emits the lane-dense interleaved output directly.  bf16 operands (f32
    # accumulation in-kernel) per the MXU native rate.
    wpw = (w_pw.reshape(Cout, Cin) * scale2[:, None]).T.astype(jnp.float32)    # (Cin, Cout)
    wbd = jnp.kron(jnp.eye(W, dtype=jnp.float32), wpw).astype(mxu_dtype)       # (W*Cin, W*Cout)
    b2_lane = jnp.tile(bias2.astype(jnp.float32), W).reshape(1, W * Cout)

    # NCHW -> NHWC, pad H/W by 2, merge (W+4, Cin) into one lane axis.  The
    # final reshape is a free row-major relabel; XLA fuses transpose+pad into
    # a single copy pass over the input.
    x_cl = jnp.transpose(x_nchw, (0, 2, 3, 1))
    x_pad = jnp.pad(x_cl, ((0, 0), (PAD, PAD), (PAD, PAD), (0, 0)))
    Hp, Wp = H + 2 * PAD, W + 2 * PAD
    x_il = x_pad.reshape(B, Hp, Wp * Cin)

    # Spatial strip tiling.  For large images pick the biggest strip whose
    # double-buffered in/out slabs stay well inside the scoped-VMEM budget
    # (<= ~32-40 MiB on v7x's 64 MiB/TC).
    strip = strip_rows if (strip_rows > 0 and H % strip_rows == 0) else H
    n_strips = H // strip

    kernel = functools.partial(_ds_layer5_kernel, cin=Cin)

    flops = 2 * B * H * W * (K * K * Cin + Cin * Cout)
    bytes_accessed = 4 * (B * Hp * Wp * Cin + B * H * W * Cout
                          + (K * K + 1) * W * Cin + (W * Cin + 1) * W * Cout)

    out_il = pl.pallas_call(
        kernel,
        out_shape=jax.ShapeDtypeStruct((B, H, W * Cout), x_nchw.dtype),
        grid_spec=pltpu.PrefetchScalarGridSpec(
            num_scalar_prefetch=0,
            grid=(B, n_strips),
            in_specs=[
                # whole padded image per batch element, resident across strips
                pl.BlockSpec((None, Hp, Wp * Cin), lambda b, s: (b, 0, 0)),
                pl.BlockSpec((K * K, W * Cin), lambda b, s: (0, 0)),
                pl.BlockSpec((1, W * Cin), lambda b, s: (0, 0)),
                pl.BlockSpec((W * Cin, W * Cout), lambda b, s: (0, 0)),
                pl.BlockSpec((1, W * Cout), lambda b, s: (0, 0)),
            ],
            out_specs=pl.BlockSpec((None, strip, W * Cout),
                                   lambda b, s: (b, s, 0)),
        ),
        compiler_params=pltpu.CompilerParams(
            dimension_semantics=("parallel", "parallel"),
            vmem_limit_bytes=32 * 1024 * 1024,   # conservative: fits v7x 64 MiB/TC
        ),
        cost_estimate=pl.CostEstimate(flops=flops, transcendentals=0,
                                      bytes_accessed=bytes_accessed),
    )(x_il, wdw_lane, b1_lane, wbd, b2_lane)

    # (B, H, W*Cout) -> (B, H, W, Cout) is a free relabel; only the final
    # NHWC -> NCHW transpose costs an HBM pass (forced by the NCHW interface).
    return jnp.transpose(out_il.reshape(B, H, W, Cout), (0, 3, 1, 2))


def ds_layer5_reference(x, w_dw, w_pw, bn1, bn2, eps=1e-5):
    """Pure-JAX reference mirroring the PyTorch module (eval-mode BN)."""
    g1, be1, m1, v1 = bn1
    g2, be2, m2, v2 = bn2
    Cin = x.shape[1]

    dw = jax.lax.conv_general_dilated(
        x, w_dw, window_strides=(1, 1), padding=((PAD, PAD), (PAD, PAD)),
        feature_group_count=Cin,
        dimension_numbers=("NCHW", "OIHW", "NCHW"))
    h1 = jax.nn.relu(
        g1[None, :, None, None] * (dw - m1[None, :, None, None])
        / jnp.sqrt(v1[None, :, None, None] + eps) + be1[None, :, None, None])

    pw = jax.lax.conv_general_dilated(
        h1, w_pw, window_strides=(1, 1), padding=((0, 0), (0, 0)),
        dimension_numbers=("NCHW", "OIHW", "NCHW"))
    h2 = jax.nn.relu(
        g2[None, :, None, None] * (pw - m2[None, :, None, None])
        / jnp.sqrt(v2[None, :, None, None] + eps) + be2[None, :, None, None])
    return h2


if __name__ == "__main__":
    key = jax.random.PRNGKey(0)
    ks = jax.random.split(key, 12)

    B, Cin, Cout, H, W = 2, 4, 8, 16, 16
    x = jax.random.normal(ks[0], (B, Cin, H, W), dtype=jnp.float32)
    w_dw = 0.2 * jax.random.normal(ks[1], (Cin, 1, K, K), dtype=jnp.float32)
    w_pw = 0.2 * jax.random.normal(ks[2], (Cout, Cin, 1, 1), dtype=jnp.float32)

    gamma1 = 1.0 + 0.1 * jax.random.normal(ks[3], (Cin,), dtype=jnp.float32)
    beta1 = 0.1 * jax.random.normal(ks[4], (Cin,), dtype=jnp.float32)
    mean1 = 0.1 * jax.random.normal(ks[5], (Cin,), dtype=jnp.float32)
    var1 = jax.random.uniform(ks[6], (Cin,), minval=0.5, maxval=1.5)

    gamma2 = 1.0 + 0.1 * jax.random.normal(ks[7], (Cout,), dtype=jnp.float32)
    beta2 = 0.1 * jax.random.normal(ks[8], (Cout,), dtype=jnp.float32)
    mean2 = 0.1 * jax.random.normal(ks[9], (Cout,), dtype=jnp.float32)
    var2 = jax.random.uniform(ks[10], (Cout,), minval=0.5, maxval=1.5)

    bn1 = (gamma1, beta1, mean1, var1)
    bn2 = (gamma2, beta2, mean2, var2)

    ref = ds_layer5_reference(x, w_dw, w_pw, bn1, bn2)

    # Exact-precision path (f32 MXU operands): matches the reference tightly.
    out_f32 = jax.block_until_ready(
        ds_layer5_forward(x, w_dw, w_pw, bn1, bn2, mxu_dtype=jnp.float32))
    assert out_f32.shape == (B, Cout, H, W)
    assert jnp.allclose(out_f32, ref, atol=1e-4, rtol=1e-4)

    # Default fast path (bf16 MXU operands, f32 accumulation).
    out_bf16 = jax.block_until_ready(
        ds_layer5_forward(x, w_dw, w_pw, bn1, bn2))
    assert out_bf16.shape == (B, Cout, H, W)
    assert jnp.allclose(out_bf16, ref, atol=5e-2, rtol=5e-2)

    print("KERNEL_OK")
</pallas_src>

<mosaic_0001>
module attributes {stable_mosaic.version = 11 : i64} {
  func.func @_ds_layer5_kernel(%arg0: i32, %arg1: i32, %arg2: memref<1x20x80xf32, #tpu.memory_space<vmem>>, %arg3: memref<25x64xf32, #tpu.memory_space<vmem>>, %arg4: memref<1x64xf32, #tpu.memory_space<vmem>>, %arg5: memref<64x128xf32, #tpu.memory_space<vmem>>, %arg6: memref<1x128xf32, #tpu.memory_space<vmem>>, %arg7: memref<1x8x128xf32, #tpu.memory_space<vmem>>) attributes {dimension_semantics = [#tpu.dimension_semantics<parallel>, #tpu.dimension_semantics<parallel>], iteration_bounds = array<i64: 2, 2>, scalar_prefetch = 0 : i64, scratch_operands = 0 : i64, tpu.core_type = #tpu.core_type<tc>, window_params = [{transform_indices = @transform_0, window_bounds = array<i64: 1, 20, 80>}, {pipeline_mode = #tpu.pipeline_mode<synchronous>, transform_indices = @transform_1, window_bounds = array<i64: 25, 64>}, {pipeline_mode = #tpu.pipeline_mode<synchronous>, transform_indices = @transform_2, window_bounds = array<i64: 1, 64>}, {pipeline_mode = #tpu.pipeline_mode<synchronous>, transform_indices = @transform_3, window_bounds = array<i64: 64, 128>}, {pipeline_mode = #tpu.pipeline_mode<synchronous>, transform_indices = @transform_4, window_bounds = array<i64: 1, 128>}, {transform_indices = @transform_5, window_bounds = array<i64: 1, 8, 128>}]} {
    %c8_i32 = arith.constant 8 : i32
    %0 = arith.muli %arg1, %c8_i32 : i32
    %1 = tpu.assume_multiple %0, 8 : i32
    %c0 = arith.constant 0 : index
    %2 = arith.index_cast %1 : i32 to index
    %c0_0 = arith.constant 0 : index
    %3 = vector.load %arg2[%c0, %2, %c0_0] : memref<1x20x80xf32, #tpu.memory_space<vmem>>, vector<1x12x80xf32>
    %4 = vector.shape_cast %3 : vector<1x12x80xf32> to vector<12x80xf32>
    %5 = vector.extract_strided_slice %4 {offsets = [0, 0], sizes = [12, 64], strides = [1, 1]} : vector<12x80xf32> to vector<12x64xf32>
    %6 = vector.extract_strided_slice %4 {offsets = [0, 4], sizes = [12, 64], strides = [1, 1]} : vector<12x80xf32> to vector<12x64xf32>
    %7 = vector.extract_strided_slice %4 {offsets = [0, 8], sizes = [12, 64], strides = [1, 1]} : vector<12x80xf32> to vector<12x64xf32>
    %8 = vector.extract_strided_slice %4 {offsets = [0, 12], sizes = [12, 64], strides = [1, 1]} : vector<12x80xf32> to vector<12x64xf32>
    %9 = vector.extract_strided_slice %4 {offsets = [0, 16], sizes = [12, 64], strides = [1, 1]} : vector<12x80xf32> to vector<12x64xf32>
    %c0_1 = arith.constant 0 : index
    %c0_2 = arith.constant 0 : index
    %10 = vector.load %arg4[%c0_1, %c0_2] : memref<1x64xf32, #tpu.memory_space<vmem>>, vector<1x64xf32>
    %11 = vector.shape_cast %10 : vector<1x64xf32> to vector<1x64xf32>
    %12 = vector.broadcast %11 : vector<1x64xf32> to vector<8x64xf32>
    %c0_3 = arith.constant 0 : index
    %c0_4 = arith.constant 0 : index
    %13 = vector.load %arg3[%c0_3, %c0_4] : memref<25x64xf32, #tpu.memory_space<vmem>>, vector<1x64xf32>
    %14 = vector.broadcast %13 : vector<1x64xf32> to vector<12x64xf32>
    %15 = arith.mulf %14, %5 : vector<12x64xf32>
    %c1 = arith.constant 1 : index
    %c0_5 = arith.constant 0 : index
    %16 = vector.load %arg3[%c1, %c0_5] : memref<25x64xf32, #tpu.memory_space<vmem>>, vector<1x64xf32>
    %17 = vector.broadcast %16 : vector<1x64xf32> to vector<12x64xf32>
    %18 = arith.mulf %17, %6 : vector<12x64xf32>
    %19 = arith.addf %15, %18 : vector<12x64xf32>
    %c2 = arith.constant 2 : index
    %c0_6 = arith.constant 0 : index
    %20 = vector.load %arg3[%c2, %c0_6] : memref<25x64xf32, #tpu.memory_space<vmem>>, vector<1x64xf32>
    %21 = vector.broadcast %20 : vector<1x64xf32> to vector<12x64xf32>
    %22 = arith.mulf %21, %7 : vector<12x64xf32>
    %23 = arith.addf %19, %22 : vector<12x64xf32>
    %c3 = arith.constant 3 : index
    %c0_7 = arith.constant 0 : index
    %24 = vector.load %arg3[%c3, %c0_7] : memref<25x64xf32, #tpu.memory_space<vmem>>, vector<1x64xf32>
    %25 = vector.broadcast %24 : vector<1x64xf32> to vector<12x64xf32>
    %26 = arith.mulf %25, %8 : vector<12x64xf32>
    %27 = arith.addf %23, %26 : vector<12x64xf32>
    %c4 = arith.constant 4 : index
    %c0_8 = arith.constant 0 : index
    %28 = vector.load %arg3[%c4, %c0_8] : memref<25x64xf32, #tpu.memory_space<vmem>>, vector<1x64xf32>
    %29 = vector.broadcast %28 : vector<1x64xf32> to vector<12x64xf32>
    %30 = arith.mulf %29, %9 : vector<12x64xf32>
    %31 = arith.addf %27, %30 : vector<12x64xf32>
    %32 = vector.extract_strided_slice %31 {offsets = [0, 0], sizes = [8, 64], strides = [1, 1]} : vector<12x64xf32> to vector<8x64xf32>
    %33 = arith.addf %12, %32 : vector<8x64xf32>
    %c5 = arith.constant 5 : index
    %c0_9 = arith.constant 0 : index
    %34 = vector.load %arg3[%c5, %c0_9] : memref<25x64xf32, #tpu.memory_space<vmem>>, vector<1x64xf32>
    %35 = vector.broadcast %34 : vector<1x64xf32> to vector<12x64xf32>
    %36 = arith.mulf %35, %5 : vector<12x64xf32>
    %c6 = arith.constant 6 : index
    %c0_10 = arith.constant 0 : index
    %37 = vector.load %arg3[%c6, %c0_10] : memref<25x64xf32, #tpu.memory_space<vmem>>, vector<1x64xf32>
    %38 = vector.broadcast %37 : vector<1x64xf32> to vector<12x64xf32>
    %39 = arith.mulf %38, %6 : vector<12x64xf32>
    %40 = arith.addf %36, %39 : vector<12x64xf32>
    %c7 = arith.constant 7 : index
    %c0_11 = arith.constant 0 : index
    %41 = vector.load %arg3[%c7, %c0_11] : memref<25x64xf32, #tpu.memory_space<vmem>>, vector<1x64xf32>
    %42 = vector.broadcast %41 : vector<1x64xf32> to vector<12x64xf32>
    %43 = arith.mulf %42, %7 : vector<12x64xf32>
    %44 = arith.addf %40, %43 : vector<12x64xf32>
    %c8 = arith.constant 8 : index
    %c0_12 = arith.constant 0 : index
    %45 = vector.load %arg3[%c8, %c0_12] : memref<25x64xf32, #tpu.memory_space<vmem>>, vector<1x64xf32>
    %46 = vector.broadcast %45 : vector<1x64xf32> to vector<12x64xf32>
    %47 = arith.mulf %46, %8 : vector<12x64xf32>
    %48 = arith.addf %44, %47 : vector<12x64xf32>
    %c9 = arith.constant 9 : index
    %c0_13 = arith.constant 0 : index
    %49 = vector.load %arg3[%c9, %c0_13] : memref<25x64xf32, #tpu.memory_space<vmem>>, vector<1x64xf32>
    %50 = vector.broadcast %49 : vector<1x64xf32> to vector<12x64xf32>
    %51 = arith.mulf %50, %9 : vector<12x64xf32>
    %52 = arith.addf %48, %51 : vector<12x64xf32>
    %53 = vector.extract_strided_slice %52 {offsets = [1, 0], sizes = [8, 64], strides = [1, 1]} : vector<12x64xf32> to vector<8x64xf32>
    %54 = arith.addf %33, %53 : vector<8x64xf32>
    %c10 = arith.constant 10 : index
    %c0_14 = arith.constant 0 : index
    %55 = vector.load %arg3[%c10, %c0_14] : memref<25x64xf32, #tpu.memory_space<vmem>>, vector<1x64xf32>
    %56 = vector.broadcast %55 : vector<1x64xf32> to vector<12x64xf32>
    %57 = arith.mulf %56, %5 : vector<12x64xf32>
    %c11 = arith.constant 11 : index
    %c0_15 = arith.constant 0 : index
    %58 = vector.load %arg3[%c11, %c0_15] : memref<25x64xf32, #tpu.memory_space<vmem>>, vector<1x64xf32>
    %59 = vector.broadcast %58 : vector<1x64xf32> to vector<12x64xf32>
    %60 = arith.mulf %59, %6 : vector<12x64xf32>
    %61 = arith.addf %57, %60 : vector<12x64xf32>
    %c12 = arith.constant 12 : index
    %c0_16 = arith.constant 0 : index
    %62 = vector.load %arg3[%c12, %c0_16] : memref<25x64xf32, #tpu.memory_space<vmem>>, vector<1x64xf32>
    %63 = vector.broadcast %62 : vector<1x64xf32> to vector<12x64xf32>
    %64 = arith.mulf %63, %7 : vector<12x64xf32>
    %65 = arith.addf %61, %64 : vector<12x64xf32>
    %c13 = arith.constant 13 : index
    %c0_17 = arith.constant 0 : index
    %66 = vector.load %arg3[%c13, %c0_17] : memref<25x64xf32, #tpu.memory_space<vmem>>, vector<1x64xf32>
    %67 = vector.broadcast %66 : vector<1x64xf32> to vector<12x64xf32>
    %68 = arith.mulf %67, %8 : vector<12x64xf32>
    %69 = arith.addf %65, %68 : vector<12x64xf32>
    %c14 = arith.constant 14 : index
    %c0_18 = arith.constant 0 : index
    %70 = vector.load %arg3[%c14, %c0_18] : memref<25x64xf32, #tpu.memory_space<vmem>>, vector<1x64xf32>
    %71 = vector.broadcast %70 : vector<1x64xf32> to vector<12x64xf32>
    %72 = arith.mulf %71, %9 : vector<12x64xf32>
    %73 = arith.addf %69, %72 : vector<12x64xf32>
    %74 = vector.extract_strided_slice %73 {offsets = [2, 0], sizes = [8, 64], strides = [1, 1]} : vector<12x64xf32> to vector<8x64xf32>
    %75 = arith.addf %54, %74 : vector<8x64xf32>
    %c15 = arith.constant 15 : index
    %c0_19 = arith.constant 0 : index
    %76 = vector.load %arg3[%c15, %c0_19] : memref<25x64xf32, #tpu.memory_space<vmem>>, vector<1x64xf32>
    %77 = vector.broadcast %76 : vector<1x64xf32> to vector<12x64xf32>
    %78 = arith.mulf %77, %5 : vector<12x64xf32>
    %c16 = arith.constant 16 : index
    %c0_20 = arith.constant 0 : index
    %79 = vector.load %arg3[%c16, %c0_20] : memref<25x64xf32, #tpu.memory_space<vmem>>, vector<1x64xf32>
    %80 = vector.broadcast %79 : vector<1x64xf32> to vector<12x64xf32>
    %81 = arith.mulf %80, %6 : vector<12x64xf32>
    %82 = arith.addf %78, %81 : vector<12x64xf32>
    %c17 = arith.constant 17 : index
    %c0_21 = arith.constant 0 : index
    %83 = vector.load %arg3[%c17, %c0_21] : memref<25x64xf32, #tpu.memory_space<vmem>>, vector<1x64xf32>
    %84 = vector.broadcast %83 : vector<1x64xf32> to vector<12x64xf32>
    %85 = arith.mulf %84, %7 : vector<12x64xf32>
    %86 = arith.addf %82, %85 : vector<12x64xf32>
    %c18 = arith.constant 18 : index
    %c0_22 = arith.constant 0 : index
    %87 = vector.load %arg3[%c18, %c0_22] : memref<25x64xf32, #tpu.memory_space<vmem>>, vector<1x64xf32>
    %88 = vector.broadcast %87 : vector<1x64xf32> to vector<12x64xf32>
    %89 = arith.mulf %88, %8 : vector<12x64xf32>
    %90 = arith.addf %86, %89 : vector<12x64xf32>
    %c19 = arith.constant 19 : index
    %c0_23 = arith.constant 0 : index
    %91 = vector.load %arg3[%c19, %c0_23] : memref<25x64xf32, #tpu.memory_space<vmem>>, vector<1x64xf32>
    %92 = vector.broadcast %91 : vector<1x64xf32> to vector<12x64xf32>
    %93 = arith.mulf %92, %9 : vector<12x64xf32>
    %94 = arith.addf %90, %93 : vector<12x64xf32>
    %95 = vector.extract_strided_slice %94 {offsets = [3, 0], sizes = [8, 64], strides = [1, 1]} : vector<12x64xf32> to vector<8x64xf32>
    %96 = arith.addf %75, %95 : vector<8x64xf32>
    %c20 = arith.constant 20 : index
    %c0_24 = arith.constant 0 : index
    %97 = vector.load %arg3[%c20, %c0_24] : memref<25x64xf32, #tpu.memory_space<vmem>>, vector<1x64xf32>
    %98 = vector.broadcast %97 : vector<1x64xf32> to vector<12x64xf32>
    %99 = arith.mulf %98, %5 : vector<12x64xf32>
    %c21 = arith.constant 21 : index
    %c0_25 = arith.constant 0 : index
    %100 = vector.load %arg3[%c21, %c0_25] : memref<25x64xf32, #tpu.memory_space<vmem>>, vector<1x64xf32>
    %101 = vector.broadcast %100 : vector<1x64xf32> to vector<12x64xf32>
    %102 = arith.mulf %101, %6 : vector<12x64xf32>
    %103 = arith.addf %99, %102 : vector<12x64xf32>
    %c22 = arith.constant 22 : index
    %c0_26 = arith.constant 0 : index
    %104 = vector.load %arg3[%c22, %c0_26] : memref<25x64xf32, #tpu.memory_space<vmem>>, vector<1x64xf32>
    %105 = vector.broadcast %104 : vector<1x64xf32> to vector<12x64xf32>
    %106 = arith.mulf %105, %7 : vector<12x64xf32>
    %107 = arith.addf %103, %106 : vector<12x64xf32>
    %c23 = arith.constant 23 : index
    %c0_27 = arith.constant 0 : index
    %108 = vector.load %arg3[%c23, %c0_27] : memref<25x64xf32, #tpu.memory_space<vmem>>, vector<1x64xf32>
    %109 = vector.broadcast %108 : vector<1x64xf32> to vector<12x64xf32>
    %110 = arith.mulf %109, %8 : vector<12x64xf32>
    %111 = arith.addf %107, %110 : vector<12x64xf32>
    %c24 = arith.constant 24 : index
    %c0_28 = arith.constant 0 : index
    %112 = vector.load %arg3[%c24, %c0_28] : memref<25x64xf32, #tpu.memory_space<vmem>>, vector<1x64xf32>
    %113 = vector.broadcast %112 : vector<1x64xf32> to vector<12x64xf32>
    %114 = arith.mulf %113, %9 : vector<12x64xf32>
    %115 = arith.addf %111, %114 : vector<12x64xf32>
    %116 = vector.extract_strided_slice %115 {offsets = [4, 0], sizes = [8, 64], strides = [1, 1]} : vector<12x64xf32> to vector<8x64xf32>
    %117 = arith.addf %96, %116 : vector<8x64xf32>
    %cst = arith.constant 0.000000e+00 : f32
    %118 = vector.broadcast %cst : f32 to vector<8x64xf32>
    %119 = arith.maximumf %117, %118 : vector<8x64xf32>
    %c0_29 = arith.constant 0 : index
    %c0_30 = arith.constant 0 : index
    %120 = vector.load %arg5[%c0_29, %c0_30] : memref<64x128xf32, #tpu.memory_space<vmem>>, vector<64x128xf32>
    %cst_31 = arith.constant dense<0.000000e+00> : vector<8x128xf32>
    %121 = tpu.matmul %119, %120, %cst_31 {dimension_numbers = #tpu.dot_dimension_numbers<[1], [0], [0], [1], [0, 0, 1, 1], [], []>} : vector<8x64xf32>, vector<64x128xf32>, vector<8x128xf32> -> vector<8x128xf32>
    %c0_32 = arith.constant 0 : index
    %c0_33 = arith.constant 0 : index
    %122 = vector.load %arg6[%c0_32, %c0_33] : memref<1x128xf32, #tpu.memory_space<vmem>>, vector<1x128xf32>
    %123 = vector.broadcast %122 : vector<1x128xf32> to vector<8x128xf32>
    %124 = arith.addf %121, %123 : vector<8x128xf32>
    %cst_34 = arith.constant 0.000000e+00 : f32
    %125 = vector.broadcast %cst_34 : f32 to vector<8x128xf32>
    %126 = arith.maximumf %124, %125 : vector<8x128xf32>
    %c0_35 = arith.constant 0 : index
    %c0_36 = arith.constant 0 : index
    %c0_37 = arith.constant 0 : index
    %127 = vector.load %arg7[%c0_35, %c0_36, %c0_37] : memref<1x8x128xf32, #tpu.memory_space<vmem>>, vector<1x8x128xf32>
    %128 = vector.shape_cast %127 : vector<1x8x128xf32> to vector<8x128xf32>
    %129 = vector.shape_cast %126 : vector<8x128xf32> to vector<1x8x128xf32>
    tpu.vector_store %arg7[%c0_35, %c0_36, %c0_37], %129 {strides = array<i32>} : memref<1x8x128xf32, #tpu.memory_space<vmem>>, vector<1x8x128xf32>,
    return
  }
  func.func @transform_0(%arg0: i32, %arg1: i32) -> (i32, i32, i32) {
    %c0_i32 = arith.constant 0 : i32
    %c0_i32_0 = arith.constant 0 : i32
    %c0_i32_1 = arith.constant 0 : i32
    return %arg0, %c0_i32, %c0_i32_0 : i32, i32, i32
  }
  func.func @transform_1(%arg0: i32, %arg1: i32) -> (i32, i32) {
    %c0_i32 = arith.constant 0 : i32
    %c0_i32_0 = arith.constant 0 : i32
    %c0_i32_1 = arith.constant 0 : i32
    return %c0_i32, %c0_i32_0 : i32, i32
  }
  func.func @transform_2(%arg0: i32, %arg1: i32) -> (i32, i32) {
    %c0_i32 = arith.constant 0 : i32
    %c0_i32_0 = arith.constant 0 : i32
    %c0_i32_1 = arith.constant 0 : i32
    return %c0_i32, %c0_i32_0 : i32, i32
  }
  func.func @transform_3(%arg0: i32, %arg1: i32) -> (i32, i32) {
    %c0_i32 = arith.constant 0 : i32
    %c0_i32_0 = arith.constant 0 : i32
    %c0_i32_1 = arith.constant 0 : i32
    return %c0_i32, %c0_i32_0 : i32, i32
  }
  func.func @transform_4(%arg0: i32, %arg1: i32) -> (i32, i32) {
    %c0_i32 = arith.constant 0 : i32
    %c0_i32_0 = arith.constant 0 : i32
    %c0_i32_1 = arith.constant 0 : i32
    return %c0_i32, %c0_i32_0 : i32, i32
  }
  func.func @transform_5(%arg0: i32, %arg1: i32) -> (i32, i32, i32) {
    %c0_i32 = arith.constant 0 : i32
    %c0_i32_0 = arith.constant 0 : i32
    return %arg0, %arg1, %c0_i32 : i32, i32, i32
  }
}

</mosaic_0001>

<bundles_post_ra>
// kernel: tpu_custom_call.1
= control target key start
LH: loop header
LB: loop body
LE: loop exit
PB: predicated region body
PF: predicated region fallthrough
CT: control target
= control target key end

     0   :  { %10 = vsyncpa [#allocation3], 0  ;;  %s1252_s0 = inlined_call_operand.vmem [shape: f32[2,20,80], index: 0, kind: input, shape index: {}]   ;;  %s1253_s1 = inlined_call_operand.vmem [shape: f32[25,64], index: 1, kind: input, shape index: {}]   ;;  %s1254_s2 = inlined_call_operand.vmem [shape: f32[1,64], index: 2, kind: input, shape index: {}]   ;;  %s1255_s3 = inlined_call_operand.vmem [shape: f32[64,128], index: 3, kind: input, shape index: {}]   ;;  %s1256_s4 = inlined_call_operand.vmem [shape: f32[1,128], index: 4, kind: input, shape index: {}]   ;;  %s1257_s5 = inlined_call_operand.hbm [shape: f32[2,16,128], index: 5, kind: output, shape index: {}]  }
   0x1   :  { %12 = vsyncpa [#allocation3 + $0x1], 0  ;;  %s989_s18 = smov 0   ;;  %s991_s19 = smov 0  }
   0x2   :  { %s993_s20 = smov 0   ;;  %s995_s21 = smov 0  }
   0x3   :  { %s997_s22 = smov 0   ;;  %s999_s23 = smov 0  }
   0x4   :  { %s1001_s24 = smov 0   ;;  %s1003_s25 = smov 0  }
   0x5 LB: > { %s695_s26 = sadd.s32 4294967295, %s949_s25   ;;  %s696_s27 = sadd.s32 4294967294, %s949_s25   ;;  %s949_s25 = sphi %s1003_s25, %s18_s25   ;;  %s945_s24 = sphi %s1001_s24, %s1266_s24   ;;  %s941_s23 = sphi %s999_s23, %s1265_s23   ;;  %s937_s22 = sphi %s997_s22, %s1264_s22   ;;  %s933_s21 = sphi %s995_s21, %s1263_s21   ;;  %s929_s20 = sphi %s993_s20, %s1262_s20   ;;  %s925_s19 = sphi %s991_s19, %s1261_s19   ;;  %s921_s18 = sphi %s989_s18, %s1260_s18  }
   0x6   : > { %s27_s28 = sadd.s32 1, %s941_s23  ;;  %s30_s29 = sadd.s32 1, %s945_s24 }
   0x7   : > { %p28_p0 = scmp.ge.s32.totalorder %s27_s28, 2  ;;  %p159_p1 = scmp.ne.s32.totalorder %s929_s20, %s925_s19 }
   0x8   : > { %p160_p2 = scmp.eq.s32.totalorder %s695_s26, 3  ;;  %p165_p5 = scmp.ne.s32.totalorder %s925_s19, %s921_s18 }
   0x9   : > { %s1268_s28 = smov (%p28_p0, %s27_s28), 0  ;;  %s1270_s29 = smov (!%p28_p0, %s30_s29), %s945_s24 }
   0xa   : > { %s145_s30 = ssub.s32 %s941_s23, %s1268_s28  ;;  %p1040_p3 = por %p160_p2, %p159_p1 }
   0xb   : > { %p32_p4 = scmp.ge.s32.totalorder %s1270_s29, 2  ;;  %p166_p6 = scmp.eq.s32.totalorder %s696_s27, 3 }
   0xc   : > { %p699_p7 = scmp.ge.s32.totalorder %s949_s25, 1  ;;  %p204_p9 = scmp.lt.s32.totalorder %s949_s25, 5 }
   0xd   : > { %s1272_s29 = smov (%p32_p4, %s1270_s29), 0  ;;  %p1049_p8 = por %p166_p6, %p165_p5 }
   0xe   : > { %s144_s8 = ssub.s32 %s945_s24, %s1272_s29  ;;  %s149_s9 = sadd.s32 1, %s929_s20 }
   0xf   : > { %s146_s10 = sor.u32 %s145_s30, %s144_s8  ;;  %p205_p10 = pnand %p699_p7, %p204_p9 }
  0x10   : > { %p147_p11 = scmp.eq.s32.totalorder %s146_s10, 0  ;;  %p232_p12 = scmp.lt.s32.totalorder (!%p205_p10), %s937_s22, 1  ;;  %v514_v2 = vld [vmem:[%s1255_s3] sm:$0xff] (!%p205_p10)  ;;  %v515_v3 = vld [vmem:[%s1255_s3 + $0x8] sm:$0xff] (!%p205_p10)  ;;  %v516_v4 = vld [vmem:[%s1255_s3 + $0x10] sm:$0xff] (!%p205_p10)  ;;  %v955_v7 = vmov (!%p205_p10), 0.0|0.0  }
  0x11   : > { %208 = sbr.rel (%p205_p10) target bundleno = 407 (0x197), region = 40  ;;  %s702_s14 = sshll.u32 (!%p205_p10), %s933_s21, 3  ;;  %v765_v5 = vpack.c.bf16 (!%p205_p10), %v515_v3, %v514_v2  ;;  %v517_v6 = vld [vmem:[%s1255_s3 + $0x18] sm:$0xff] (!%p205_p10)  ;;  %764 = vmatprep.subr.bf16.mxu0 (!%p205_p10), %v955_v7  ;;  %vm956_vm0 = vmmov (!%p205_p10), 0   ;;  %v957_v8 = vmov (!%p205_p10), 0.0   ;;  %v518_v10 = vld [vmem:[%s1255_s3 + $0x20] sm:$0xff] (!%p205_p10) }
  0x12   : > { %s1058_s11 = scalar_select %p147_p11, %s929_s20, %s149_s9  }
  0x13   : > { %s951_s27 = smov (!%p205_p10), 120   ;;  %s952_s30 = smov (!%p205_p10), 124   ;;  %761 = vmatprep.mubr.msk.f32.mxu0 (!%p205_p10), %vm956_vm0, %v957_v8  ;;  %766 = vmatpush3.bf16.msra.mxu0 (!%p205_p10), %v765_v5  ;;  %v768_v9 = vpack.c.bf16 (!%p205_p10), %v517_v6, %v516_v4  ;;  %v519_v11 = vld [vmem:[%s1255_s3 + $0x28] sm:$0xff] (!%p205_p10)  ;;  %v520_v13 = vld [vmem:[%s1255_s3 + $0x30] sm:$0xff] (!%p205_p10)  ;;  %v521_v14 = vld [vmem:[%s1255_s3 + $0x38] sm:$0xff] (!%p205_p10)  ;;  %vm354_vm1 = vcmask (!%p205_p10), 1046528  }
  0x14   : > { %s953_s8 = smov (!%p205_p10), 116   ;;  %s954_s16 = smov (!%p205_p10), 112   ;;  %767 = vmatprep.subr.bf16.mxu0 (!%p205_p10), %v955_v7  ;;  %v771_v12 = vpack.c.bf16 (!%p205_p10), %v519_v11, %v518_v10  ;;  %v774_v15 = vpack.c.bf16 (!%p205_p10), %v521_v14, %v520_v13  ;;  %v704_v16 = vld [vmem:[%s1253_s1] ss:$0 sm:$0xff] (!%p205_p10)  ;;  %v705_v17 = vld [vmem:[%s1253_s1 + $0x1] ss:$0 sm:$0xff] (!%p205_p10) }
  0x15   : > { %v706_v18 = vld [vmem:[%s1253_s1 + $0x2] ss:$0 sm:$0xff] (!%p205_p10)  ;;  %v709_v19 = vld [vmem:[%s1253_s1 + $0x5] ss:$0 sm:$0xff] (!%p205_p10)  ;;  %v710_v20 = vld [vmem:[%s1253_s1 + $0x6] ss:$0 sm:$0xff] (!%p205_p10) }
  0x16   : > { %v714_v21 = vld [vmem:[%s1253_s1 + $0xa] ss:$0 sm:$0xff] (!%p205_p10)  ;;  %v715_v22 = vld [vmem:[%s1253_s1 + $0xb] ss:$0 sm:$0xff] (!%p205_p10)  ;;  %v719_v23 = vld [vmem:[%s1253_s1 + $0xf] ss:$0 sm:$0xff] (!%p205_p10) }
  0x17   : > { %769 = vmatpush3.bf16.msra.mxu0 (!%p205_p10), %v768_v9  ;;  %v724_v24 = vld [vmem:[%s1253_s1 + $0x14] ss:$0 sm:$0xff] (!%p205_p10)  ;;  %v711_v28 = vld [vmem:[%s1253_s1 + $0x7] ss:$0 sm:$0xff] (!%p205_p10)  ;;  %v720_v32 = vld [vmem:[%s1253_s1 + $0x10] ss:$0 sm:$0xff] (!%p205_p10) }
  0x18   : > { %s233_s12 = scalar_select %p232_p12, %s937_s22, 1  ;;  %770 = vmatprep.subr.bf16.mxu0 %v955_v7  ;;  %v725_v33 = vld [vmem:[%s1253_s1 + $0x15] ss:$0 sm:$0xff]  ;;  %v716_v35 = vld [vmem:[%s1253_s1 + $0xc] ss:$0 sm:$0xff]  ;;  %vm405_vm2 = vcmask 1045504  }
  0x19   : > { %v721_v36 = vld [vmem:[%s1253_s1 + $0x11] ss:$0 sm:$0xff]  ;;  %v726_v37 = vld [vmem:[%s1253_s1 + $0x16] ss:$0 sm:$0xff]  ;;  %v712_v63 = vld [vmem:[%s1253_s1 + $0x8] ss:$0 sm:$0xff] }
  0x1a   : > { %s776_s13 = smul.u32 24, %s233_s12  ;;  %v722_v5 = vld [vmem:[%s1253_s1 + $0x12] ss:$0 sm:$0xff]  ;;  %v707_v6 = vld [vmem:[%s1253_s1 + $0x3] ss:$0 sm:$0xff]  ;;  %vm456_vm3 = vcmask 1044480  }
  0x1b   : > { %772 = vmatpush3.bf16.msra.mxu0 %v771_v12  ;;  %v727_v10 = vld [vmem:[%s1253_s1 + $0x17] ss:$0 sm:$0xff]  ;;  %vm507_vm4 = vcmask 1043456   ;;  %vm529_vm5 = vcmask 523264  }
  0x1c   : > { %s236_s17 = scalar_lea.vmem %s1252_s0, %s776_s13  ;;  %773 = vmatprep.subr.bf16.mxu0 %v955_v7 }
  0x1d   : > { %s238_s26 = scalar_lea.vmem %s236_s17, %s702_s14 }
  0x1e   : > { %v1066_v0 = vld [vmem:[%s238_s26] sm:$0xff]  ;;  %v240_v1 = vld [vmem:[%s238_s26 + $0x8] sm:$0xf] }
  0x1f   : > { %270 = vrot.lane.b32.xlu1 %v1066_v0, %s951_s27  ;;  %260 = vrot.lane.b32.xlu0 %v1066_v0, %s952_s30  ;;  %v253_v27 = vmul.f32 %v704_v16, %v1066_v0  ;;  %v302_v29 = vmul.f32 %v709_v19, %v240_v1  ;;  %v366_v30 = vmul.f32 %v714_v21, %v240_v1 }
  0x20   : > { %775 = vmatpush3.bf16.msra.mxu0 %v774_v15  ;;  %v417_v31 = vmul.f32 %v719_v23, %v240_v1  ;;  %v468_v38 = vmul.f32 %v724_v24, %v240_v1  ;;  %v301_v39 = vmul.f32 %v709_v19, %v1066_v0  ;;  %v365_v40 = vmul.f32 %v714_v21, %v1066_v0  ;;  %v713_v21 = vld [vmem:[%s1253_s1 + $0x9] ss:$0 sm:$0xff] }
  0x21   : > { %v416_v43 = vmul.f32 %v719_v23, %v1066_v0  ;;  %v467_v44 = vmul.f32 %v724_v24, %v1066_v0 }
  0x23   : > { %321 = vrot.lane.b32.xlu1 %v240_v1, %s951_s27  ;;  %309 = vrot.lane.b32.xlu0 %v240_v1, %s952_s30  ;;  %s229_s27 = sand.u32 1, %s925_s19  }
  0x24   : > { %s700_s30 = sshll.u32 %s229_s27, 3 }
  0x25   : > { %s231_s14 = scalar_lea.vmem [#allocation2], %s700_s30  ;;  %s958_s30 = smov [#allocation2]  }
  0x26   : > { %s621_s15 = sshll.u32 %s231_s14, 4  ;;  %s1201_s15 = int_to_ptr.vmem [resolvable:$true] %s621_s15 }
  0x27   : > { %333 = vrot.lane.b32.xlu1 %v240_v1, %s953_s8  ;;  %280 = vrot.lane.b32.xlu0 %v1066_v0, %s953_s8  ;;  %s732_s8 = sshll.u32 %s937_s22, 1  ;;  %s855_s22 = scalar_lea.vmem %s1201_s15, 128 }
  0x28   : > { %s617_s9 = sadd.s32 %s933_s21, %s732_s8  ;;  %s606_s21 = scalar_lea.sflag [#allocation3], %s229_s27 }
  0x29   : > { %s733_s13 = sshll.u32 %s617_s9, 7  ;;  %p856_p13 = scmp.ne.s32.totalorder %s1201_s15, %s855_s22 }
  0x2a   : > { %s1199_s26 = scalar_lea.hbm %s1257_s5, %s733_s13  ;;  %s859_s8 = sshll.u32 %s958_s30, 4  ;;  %s860_s8 = int_to_ptr.vmem [resolvable:$false] %s859_s8 }
  0x2b   : > { %345 = vrot.lane.b32.xlu1 %v240_v1, %s954_s16  ;;  %290 = vrot.lane.b32.xlu0 %v1066_v0, %s954_s16  ;;  %v717_v0 = vld [vmem:[%s1253_s1 + $0xd] ss:$0 sm:$0xff]  ;;  %p857_p0 = pnand %p856_p13, %p1040_p3  ;;  %s861_s9 = scalar_lea.vmem %s860_s8, 256 }
  0x2c   : > { %p862_p2 = scmp.lt.s32.totalorder %s1201_s15, %s860_s8  ;;  %p863_p4 = scmp.lt.s32.totalorder %s861_s9, %s855_s22 }
  0x2d   : > { %p858_p1 = pneg %p857_p0 }
  0x2e   : > { %p864_p5 = por %p863_p4, %p862_p2 }
  0x30   : > { %p865_p6 = pnand %p864_p5, %p858_p1 }
  0x91   : > { %v271_v25 = vpop.permute.xlu1 %270  ;;  %v261_v26 = vpop.permute.xlu0 %260 }
  0x92   : > { %v263_v34 = vmul.f32 %v705_v17, %v261_v26  ;;  %v312_v41 = vmul.f32 %v710_v20, %v261_v26  ;;  %v372_v42 = vmul.f32 %v715_v22, %v261_v26  ;;  %v273_v45 = vmul.f32 %v706_v18, %v271_v25 }
  0x93   : > { %v324_v46 = vmul.f32 %v711_v28, %v271_v25  ;;  %v423_v47 = vmul.f32 %v720_v32, %v261_v26  ;;  %v474_v48 = vmul.f32 %v725_v33, %v261_v26  ;;  %v381_v50 = vmul.f32 %v716_v35, %v271_v25  ;;  %v723_v26 = vld [vmem:[%s1253_s1 + $0x13] ss:$0 sm:$0xff] }
  0x94   : > { %v264_v49 = vadd.f32 %v263_v34, %v253_v27  ;;  %v1146_v51 = vmul.f32 %v721_v36, %v271_v25  ;;  %v1148_v52 = vmul.f32 %v726_v37, %v271_v25  ;;  %v314_v57 = vadd.f32 %v312_v41, %v301_v39  ;;  %v728_v27 = vld [vmem:[%s1253_s1 + $0x18] ss:$0 sm:$0xff]  ;;  %v708_v34 = vld [vmem:[%s1253_s1 + $0x4] ss:$0 sm:$0xff] }
  0x95   : > { %v322_v53 = vpop.permute.xlu1 %321  ;;  %v310_v54 = vpop.permute.xlu0 %309  ;;  %v374_v58 = vadd.f32 %v372_v42, %v365_v40  ;;  %v425_v2 = vadd.f32 %v423_v47, %v416_v43  ;;  %v1156_v4 = vadd.f32 %v474_v48, %v467_v44 }
  0x96   : > { %v325_v55 = vmul.f32 %v711_v28, %v322_v53  ;;  %v382_v56 = vmul.f32 %v716_v35, %v322_v53  ;;  %v433_v59 = vmul.f32 %v721_v36, %v322_v53  ;;  %v313_v60 = vmul.f32 %v710_v20, %v310_v54 }
  0x97   : > { %v373_v61 = vmul.f32 %v715_v22, %v310_v54  ;;  %v424_v62 = vmul.f32 %v720_v32, %v310_v54  ;;  %v484_v1 = vmul.f32 %v726_v37, %v322_v53  ;;  %v475_v3 = vmul.f32 %v725_v33, %v310_v54  ;;  %v718_v22 = vld [vmem:[%s1253_s1 + $0xe] ss:$0 sm:$0xff]  ;;  %v703_v53 = vld [vmem:[%s1254_s2] ss:$0 sm:$0xff] }
  0x98   : > { %v315_v7 = vadd.f32 %v313_v60, %v302_v29  ;;  %v274_v13 = vadd.f32 %v273_v45, %v264_v49  ;;  %v326_v17 = vadd.f32 %v324_v46, %v314_v57  ;;  %v383_v23 = vadd.f32 %v381_v50, %v374_v58 }
  0x99   : > { %v375_v8 = vadd.f32 %v373_v61, %v366_v30  ;;  %v426_v9 = vadd.f32 %v424_v62, %v417_v31  ;;  %v334_v11 = vpop.permute.xlu1 %333  ;;  %v281_v12 = vpop.permute.xlu0 %280  ;;  %v477_v14 = vadd.f32 %v475_v3, %v468_v38 }
  0x9a   : > { %v337_v15 = vmul.f32 %v712_v63, %v334_v11  ;;  %v391_v16 = vmul.f32 %v717_v0, %v334_v11  ;;  %v442_v18 = vmul.f32 %v722_v5, %v334_v11  ;;  %v283_v19 = vmul.f32 %v707_v6, %v281_v12 }
  0x9b   : > { %v336_v20 = vmul.f32 %v712_v63, %v281_v12  ;;  %v493_v24 = vmul.f32 %v727_v10, %v334_v11  ;;  %v390_v25 = vmul.f32 %v717_v0, %v281_v12  ;;  %v327_v28 = vadd.f32 %v325_v55, %v315_v7 }
  0x9c   : > { %v384_v29 = vadd.f32 %v382_v56, %v375_v8  ;;  %v441_v30 = vmul.f32 %v722_v5, %v281_v12  ;;  %v435_v32 = vadd.f32 %v433_v59, %v426_v9  ;;  %v486_v33 = vadd.f32 %v484_v1, %v477_v14 }
  0x9d   : > { %v346_v31 = vpop.permute.xlu1 %345  ;;  %v291_v35 = vpop.permute.xlu0 %290  ;;  %v284_v36 = vadd.f32 %v283_v19, %v274_v13  ;;  %v339_v37 = vadd.f32 %v337_v15, %v327_v28  ;;  %v338_v44 = vadd.f32 %v336_v20, %v326_v17  ;;  %v492_v49 = vmul.f32 %v727_v10, %v281_v12 }
  0x9e   : > { %v349_v38 = vmul.f32 %v713_v21, %v346_v31  ;;  %v393_v39 = vadd.f32 %v391_v16, %v384_v29  ;;  %v400_v40 = vmul.f32 %v718_v22, %v346_v31  ;;  %v444_v41 = vadd.f32 %v442_v18, %v435_v32 }
  0x9f   : > { %v451_v42 = vmul.f32 %v723_v26, %v346_v31  ;;  %v502_v43 = vmul.f32 %v728_v27, %v346_v31  ;;  %v293_v47 = vmul.f32 %v708_v34, %v291_v35  ;;  %v348_v48 = vmul.f32 %v713_v21, %v291_v35  ;;  %v729_v21 = vld [vmem:[%s1256_s4] ss:$0 sm:$0xff] }
  0xa0   : > { %v351_v45 = vadd.f32 %v349_v38, %v339_v37  ;;  %v402_v46 = vadd.f32 %v400_v40, %v393_v39  ;;  %v495_v50 = vadd.f32 %v493_v24, %v486_v33  ;;  %v392_v54 = vadd.f32 %v390_v25, %v383_v23 }
  0xa1   : > { %v399_v55 = vmul.f32 %v718_v22, %v291_v35  ;;  %v453_v57 = vadd.f32 %v451_v42, %v444_v41  ;;  %v294_v58 = vadd.f32 %v293_v47, %v284_v36  ;;  %v350_v59 = vadd.f32 %v348_v48, %v338_v44 }
  0xa2   : > { %v356_v56 = vrot.slane %v351_v45, 1  ;;  %v407_v60 = vrot.slane %v402_v46, 2  ;;  %v504_v61 = vadd.f32 %v502_v43, %v495_v50  ;;  %v434_v63 = vadd.f32 %v1146_v51, %v425_v2 }
  0xa3   : > { %v401_v62 = vadd.f32 %v399_v55, %v392_v54  ;;  %v295_v0 = vadd.f32 %v703_v53, %v294_v58  ;;  %v355_v1 = vrot.slane %v350_v59, 1  ;;  %v450_v3 = vmul.f32 %v723_v26, %v291_v35 }
  0xa4   : > { %v485_v5 = vadd.f32 %v1148_v52, %v1156_v4  ;;  %v443_v7 = vadd.f32 %v441_v30, %v434_v63  ;;  %v501_v8 = vmul.f32 %v728_v27, %v291_v35  ;;  %v458_v11 = vrot.slane %v453_v57, 3 }
  0xa5   : > { %v406_v6 = vrot.slane %v401_v62, 2  ;;  %v357_v9 = vsel %vm354_vm1, %v355_v1, %v356_v56  ;;  %v509_v15 = vrot.slane %v504_v61, 4 }
  0xa6   : > { %v494_v10 = vadd.f32 %v492_v49, %v485_v5  ;;  %v359_v12 = vadd.f32 %v357_v9, %v295_v0  ;;  %v452_v14 = vadd.f32 %v450_v3, %v443_v7 }
  0xa7   : > { %v408_v13 = vsel %vm405_vm2, %v406_v6, %v407_v60 }
  0xa8   : > { %v503_v51 = vadd.f32 %v501_v8, %v494_v10  ;;  %v457_v2 = vrot.slane %v452_v14, 3  ;;  %v410_v16 = vadd.f32 %v408_v13, %v359_v12 }
  0xaa   : > { %v508_v52 = vrot.slane %v503_v51, 4  ;;  %v459_v4 = vsel %vm456_vm3, %v457_v2, %v458_v11 }
  0xab   : > { %v461_v17 = vadd.f32 %v459_v4, %v410_v16 }
  0xac   : > { %v510_v18 = vsel %vm507_vm4, %v508_v52, %v509_v15 }
  0xad   : > { %v512_v19 = vadd.f32 %v510_v18, %v461_v17 }
  0xaf   : > { %v513_v20 = vmax.f32 %v512_v19, 0.0 }
  0xb1   : > { %762 = vmatmul.mubr.msk.f32.vlgmr.msra.gmra.mrb[0].mxu0 %vm529_vm5, %v513_v20 }
 0x184   : > { %v599_v22 = vpop.f32.mrb[0].mxu0 }
 0x185   : > { %v600_v23 = vadd.f32 %v729_v21, %v599_v22  ;;  %v763_v24 = vpop.f32.mrb[1].mxu0 }
 0x187   : > { %v603_v25 = vmax.f32 %v600_v23, 0.0 }
 0x189   : > { %604 = vst [vmem:[%s231_s14] sm:$0xff] %v603_v25 }
 0x18a   : > { %868 = shalt.err (!%p865_p6)
}
 0x18b   : > { %s869_s27 = scalar_lea.hbm %s1199_s26, 128  ;;  %s873_s13 = scalar_lea.hbm %s1257_s5, 512 }
 0x18c   : > { %p870_p7 = scmp.ne.s32.totalorder %s1199_s26, %s869_s27  ;;  %p874_p11 = scmp.lt.u32.totalorder %s1199_s26, %s1257_s5 }
 0x18d   : > { %p875_p12 = scmp.lt.u32.totalorder %s873_s13, %s869_s27  ;;  %p877_p0 = scmp.lt.u32.totalorder %s869_s27, %s1199_s26 }
 0x18e   : > { %p871_p9 = pnand %p870_p7, %p1040_p3 }
 0x18f   : > { %p876_p13 = por %p875_p12, %p874_p11 }
 0x190   : > { %p872_p10 = pneg %p871_p9 }
 0x191   : > { %p878_p1 = por %p877_p0, %p876_p13 }
 0x193   : > { %p879_p2 = pnand %p878_p1, %p872_p10 }
 0x195   : > { %882 = shalt.err (!%p879_p2)
}
 0x196   : > { %777 = dma.vmem_to_hbm [thread:$0]  (%p1040_p3), %s1201_s15, 128, %s1199_s26, %s606_s21  }
 0x197 PF: > { %p783_p4 = scmp.ge.s32.totalorder %s949_s25, 2  ;;  %s633_s17 = sand.u32 1, %s921_s18  }
 0x198   : > { %s634_s22 = scalar_lea.sflag [#allocation3], %s633_s17 }
 0x199   : > { %p780_p5 = pnand %p783_p4, %p1049_p8 }
 0x19b   : > { %916 = dma.done.wait (!%p780_p5), %s634_s22, 128  }
 0x19c   : > { %918 = vsyncadd (!%p780_p5), %s634_s22, 4294967168  ;;  %s18_s25 = sadd.s32 1, %s949_s25   ;;  %s1260_s18 = smov %s925_s19 }
 0x19d   : > { %p15_p6 = scmp.ge.s32.totalorder %s18_s25, 6   ;;  %s1261_s19 = smov %s929_s20 }
 0x19e   : > { %s1262_s20 = smov %s1058_s11  ;;  %s1263_s21 = smov %s941_s23 }
 0x19f   : > { %s1264_s22 = smov %s945_s24  ;;  %s1265_s23 = smov %s1268_s28 }
 0x1a0   : > { %s1266_s24 = smov %s1272_s29  ;;  %17 = sbr.rel (!%p15_p6) target bundleno = 5 (0x5), region = 76 }
 0x1a7   :  { %639 = vsyncpa [#allocation3], 1 }
 0x1a8   :  { %641 = vsyncpa [#allocation3 + $0x1], 1 }

</bundles_post_ra>
